<compile_context>
chip_gen: v7x
topology: tpu7x:2x2x1
jax: 0.10.0
libtpu: 0.0.40
codegen_flags: <defaults>
</compile_context>

<pallas_src>
import jax
import jax.numpy as jnp
from jax.experimental import pallas as pl
from jax.experimental.pallas import tpu as pltpu

D_IN = 784
H1 = 256
H2 = 256
D_OUT = 1

D_OUT_PAD = 128   # lane-dense output width; real column is [:, :1]

LEAKY_SLOPE = 0.2
TB_DEFAULT = 1024  # batch tile (multiple of 8); ~9 MiB VMEM at bf16 x-stream


def _round_up(n, m):
    return ((n + m - 1) // m) * m


def _leaky_relu(x, slope=LEAKY_SLOPE):
    return jnp.where(x > 0, x, slope * x)


def discriminator_kernel(x_ref, w1_ref, b1_ref, w2_ref, b2_ref, w3_ref, b3_ref,
                         o_ref):
    # Layer 1: Linear(784 -> 256) + LeakyReLU(0.2).  bf16 operands, f32 acc.
    h1 = jnp.dot(x_ref[...], w1_ref[...],
                 preferred_element_type=jnp.float32) + b1_ref[...]
    h1 = _leaky_relu(h1)

    # Layer 2: Linear(256 -> 256) + LeakyReLU(0.2)
    h2 = jnp.dot(h1.astype(jnp.bfloat16), w2_ref[...],
                 preferred_element_type=jnp.float32) + b2_ref[...]
    h2 = _leaky_relu(h2)

    # Layer 3: Linear(256 -> 128(pad, real width 1)) + Sigmoid
    h3 = jnp.dot(h2.astype(jnp.bfloat16), w3_ref[...],
                 preferred_element_type=jnp.float32) + b3_ref[...]
    # sigmoid = 1 / (1 + exp(-x)); exp + reciprocal ride on the EUP slot,
    # free under the MXU.  approx=False keeps full-precision probabilities.
    den = 1.0 + jnp.exp(-h3)
    o_ref[...] = pl.reciprocal(den, approx=False).astype(o_ref.dtype)


def discriminator_forward(x, params, *, tb=TB_DEFAULT):
    """x: (B, 784) float32 -> (B, 1) float32."""
    w1, b1, w2, b2, w3, b3 = params
    B = x.shape[0]

    # Batch tile: multiple of 8 sublanes, capped so that (when B is large
    # enough) the grid has >= 2 steps -> both TensorCores used on v7x.
    half = _round_up(pl.cdiv(B, 2), 8)
    TB = max(8, min(tb, half))
    num_tiles = pl.cdiv(B, TB)

    # --- one-time dtype prep (bf16 MXU operands, f32 biases) ---------------
    x_bf = x.astype(jnp.bfloat16)
    w1_bf = w1.astype(jnp.bfloat16)
    w2_bf = w2.astype(jnp.bfloat16)
    # Last layer zero-padded to 128 output columns -> lane-dense stores.
    w3_bf = jnp.zeros((H2, D_OUT_PAD), jnp.bfloat16).at[:, :D_OUT].set(
        w3.astype(jnp.bfloat16))
    b3_p = jnp.zeros((1, D_OUT_PAD), jnp.float32).at[:, :D_OUT].set(b3)

    # Weights/biases: constant index_map -> fetched once, resident across grid.
    const2d = lambda shape: pl.BlockSpec(shape, lambda i: (0, 0))

    flops = 2 * B * (D_IN * H1 + H1 * H2 + H2 * D_OUT_PAD)
    transcendentals = B * D_OUT_PAD
    bytes_accessed = (
        2 * B * D_IN                                           # x stream (bf16)
        + 2 * (D_IN * H1 + H1 * H2 + H2 * D_OUT_PAD)           # weights (bf16)
        + 4 * (H1 + H2 + D_OUT_PAD)                            # biases (f32)
        + 4 * B * D_OUT_PAD)                                   # output (f32)

    out_pad = pl.pallas_call(
        discriminator_kernel,
        out_shape=jax.ShapeDtypeStruct((B, D_OUT_PAD), jnp.float32),
        grid=(num_tiles,),
        in_specs=[
            pl.BlockSpec((TB, D_IN), lambda i: (i, 0)),        # x tile (bf16)
            const2d((D_IN, H1)),                               # w1 (bf16)
            const2d((1, H1)),                                  # b1 (f32)
            const2d((H1, H2)),                                 # w2 (bf16)
            const2d((1, H2)),                                  # b2 (f32)
            const2d((H2, D_OUT_PAD)),                          # w3 (bf16, padded)
            const2d((1, D_OUT_PAD)),                           # b3 (f32, padded)
        ],
        out_specs=pl.BlockSpec((TB, D_OUT_PAD), lambda i: (i, 0)),
        compiler_params=pltpu.CompilerParams(
            dimension_semantics=("parallel",)),
        cost_estimate=pl.CostEstimate(
            flops=flops,
            transcendentals=transcendentals,
            bytes_accessed=bytes_accessed),
    )(x_bf, w1_bf, b1, w2_bf, b2, w3_bf, b3_p)

    # Drop the 127 dummy output lanes.
    return out_pad[:, :D_OUT]


def init_params(key):
    """Deterministic init mirroring nn.Linear default U(-1/sqrt(fan_in), +)."""
    keys = jax.random.split(key, 6)

    def linear(kw, kb, fan_in, fan_out):
        bound = 1.0 / jnp.sqrt(jnp.float32(fan_in))
        w = jax.random.uniform(kw, (fan_in, fan_out), jnp.float32,
                               minval=-bound, maxval=bound)
        b = jax.random.uniform(kb, (1, fan_out), jnp.float32,
                               minval=-bound, maxval=bound)
        return w, b

    w1, b1 = linear(keys[0], keys[1], D_IN, H1)
    w2, b2 = linear(keys[2], keys[3], H1, H2)
    w3, b3 = linear(keys[4], keys[5], H2, D_OUT)
    return (w1, b1, w2, b2, w3, b3)


def reference_forward(x, params):
    """Full-f32 reference matching the original PyTorch module."""
    w1, b1, w2, b2, w3, b3 = params
    h = x @ w1 + b1
    h = jnp.where(h > 0, h, LEAKY_SLOPE * h)
    h = h @ w2 + b2
    h = jnp.where(h > 0, h, LEAKY_SLOPE * h)
    return jax.nn.sigmoid(h @ w3 + b3)


if __name__ == "__main__":
    key = jax.random.PRNGKey(0)
    k_params, k_x = jax.random.split(key)

    params = init_params(k_params)
    batch = 8
    x = jax.random.normal(k_x, (batch, D_IN), jnp.float32)

    out = discriminator_forward(x, params)
    out = jax.block_until_ready(out)

    ref = reference_forward(x, params)
    assert out.shape == (batch, D_OUT), out.shape
    # Tolerance accounts for bf16 MXU operands (f32 accumulation); sigmoid
    # output is bounded in [0, 1] so absolute error stays well below this.
    assert jnp.allclose(out, ref, atol=1e-2, rtol=1e-2), \
        f"max abs err {jnp.max(jnp.abs(out - ref))}"

    print("KERNEL_OK")
</pallas_src>

<mosaic_0001>
module attributes {stable_mosaic.version = 11 : i64} {
  func.func @discriminator_kernel(%arg0: i32, %arg1: memref<8x784xbf16, #tpu.memory_space<vmem>>, %arg2: memref<784x256xbf16, #tpu.memory_space<vmem>>, %arg3: memref<1x256xf32, #tpu.memory_space<vmem>>, %arg4: memref<256x256xbf16, #tpu.memory_space<vmem>>, %arg5: memref<1x256xf32, #tpu.memory_space<vmem>>, %arg6: memref<256x128xbf16, #tpu.memory_space<vmem>>, %arg7: memref<1x128xf32, #tpu.memory_space<vmem>>, %arg8: memref<8x128xf32, #tpu.memory_space<vmem>>) attributes {dimension_semantics = [#tpu.dimension_semantics<parallel>], iteration_bounds = array<i64: 1>, scalar_prefetch = 0 : i64, scratch_operands = 0 : i64, tpu.core_type = #tpu.core_type<tc>, window_params = [{transform_indices = @transform_0, window_bounds = array<i64: 8, 784>}, {pipeline_mode = #tpu.pipeline_mode<synchronous>, transform_indices = @transform_1, window_bounds = array<i64: 784, 256>}, {pipeline_mode = #tpu.pipeline_mode<synchronous>, transform_indices = @transform_2, window_bounds = array<i64: 1, 256>}, {pipeline_mode = #tpu.pipeline_mode<synchronous>, transform_indices = @transform_3, window_bounds = array<i64: 256, 256>}, {pipeline_mode = #tpu.pipeline_mode<synchronous>, transform_indices = @transform_4, window_bounds = array<i64: 1, 256>}, {pipeline_mode = #tpu.pipeline_mode<synchronous>, transform_indices = @transform_5, window_bounds = array<i64: 256, 128>}, {pipeline_mode = #tpu.pipeline_mode<synchronous>, transform_indices = @transform_6, window_bounds = array<i64: 1, 128>}, {transform_indices = @transform_7, window_bounds = array<i64: 8, 128>}]} {
    %c0 = arith.constant 0 : index
    %c0_0 = arith.constant 0 : index
    %0 = vector.load %arg1[%c0, %c0_0] : memref<8x784xbf16, #tpu.memory_space<vmem>>, vector<8x784xbf16>
    %c0_1 = arith.constant 0 : index
    %c0_2 = arith.constant 0 : index
    %1 = vector.load %arg2[%c0_1, %c0_2] : memref<784x256xbf16, #tpu.memory_space<vmem>>, vector<784x256xbf16>
    %cst = arith.constant dense<0.000000e+00> : vector<8x256xf32>
    %2 = tpu.matmul %0, %1, %cst {dimension_numbers = #tpu.dot_dimension_numbers<[1], [0], [0], [1], [0, 0, 1, 1], [], []>} : vector<8x784xbf16>, vector<784x256xbf16>, vector<8x256xf32> -> vector<8x256xf32>
    %c0_3 = arith.constant 0 : index
    %c0_4 = arith.constant 0 : index
    %3 = vector.load %arg3[%c0_3, %c0_4] : memref<1x256xf32, #tpu.memory_space<vmem>>, vector<1x256xf32>
    %4 = vector.broadcast %3 : vector<1x256xf32> to vector<8x256xf32>
    %5 = arith.addf %2, %4 : vector<8x256xf32>
    %cst_5 = arith.constant 0.000000e+00 : f32
    %6 = vector.broadcast %cst_5 : f32 to vector<8x256xf32>
    %7 = arith.cmpf ogt, %5, %6 : vector<8x256xf32>
    %cst_6 = arith.constant 2.000000e-01 : f32
    %8 = vector.broadcast %cst_6 : f32 to vector<8x256xf32>
    %9 = arith.mulf %8, %5 : vector<8x256xf32>
    %10 = arith.select %7, %5, %9 : vector<8x256xi1>, vector<8x256xf32>
    %11 = arith.truncf %10 : vector<8x256xf32> to vector<8x256xbf16>
    %c0_7 = arith.constant 0 : index
    %c0_8 = arith.constant 0 : index
    %12 = vector.load %arg4[%c0_7, %c0_8] : memref<256x256xbf16, #tpu.memory_space<vmem>>, vector<256x256xbf16>
    %cst_9 = arith.constant dense<0.000000e+00> : vector<8x256xf32>
    %13 = tpu.matmul %11, %12, %cst_9 {dimension_numbers = #tpu.dot_dimension_numbers<[1], [0], [0], [1], [0, 0, 1, 1], [], []>} : vector<8x256xbf16>, vector<256x256xbf16>, vector<8x256xf32> -> vector<8x256xf32>
    %c0_10 = arith.constant 0 : index
    %c0_11 = arith.constant 0 : index
    %14 = vector.load %arg5[%c0_10, %c0_11] : memref<1x256xf32, #tpu.memory_space<vmem>>, vector<1x256xf32>
    %15 = vector.broadcast %14 : vector<1x256xf32> to vector<8x256xf32>
    %16 = arith.addf %13, %15 : vector<8x256xf32>
    %cst_12 = arith.constant 0.000000e+00 : f32
    %17 = vector.broadcast %cst_12 : f32 to vector<8x256xf32>
    %18 = arith.cmpf ogt, %16, %17 : vector<8x256xf32>
    %cst_13 = arith.constant 2.000000e-01 : f32
    %19 = vector.broadcast %cst_13 : f32 to vector<8x256xf32>
    %20 = arith.mulf %19, %16 : vector<8x256xf32>
    %21 = arith.select %18, %16, %20 : vector<8x256xi1>, vector<8x256xf32>
    %22 = arith.truncf %21 : vector<8x256xf32> to vector<8x256xbf16>
    %c0_14 = arith.constant 0 : index
    %c0_15 = arith.constant 0 : index
    %23 = vector.load %arg6[%c0_14, %c0_15] : memref<256x128xbf16, #tpu.memory_space<vmem>>, vector<256x128xbf16>
    %cst_16 = arith.constant dense<0.000000e+00> : vector<8x128xf32>
    %24 = tpu.matmul %22, %23, %cst_16 {dimension_numbers = #tpu.dot_dimension_numbers<[1], [0], [0], [1], [0, 0, 1, 1], [], []>} : vector<8x256xbf16>, vector<256x128xbf16>, vector<8x128xf32> -> vector<8x128xf32>
    %c0_17 = arith.constant 0 : index
    %c0_18 = arith.constant 0 : index
    %25 = vector.load %arg7[%c0_17, %c0_18] : memref<1x128xf32, #tpu.memory_space<vmem>>, vector<1x128xf32>
    %26 = vector.broadcast %25 : vector<1x128xf32> to vector<8x128xf32>
    %27 = arith.addf %24, %26 : vector<8x128xf32>
    %cst_19 = arith.constant 0.000000e+00 : f32
    %28 = vector.broadcast %cst_19 : f32 to vector<8x128xf32>
    %29 = arith.subf %28, %27 : vector<8x128xf32>
    %30 = math.exp %29 : vector<8x128xf32>
    %cst_20 = arith.constant 1.000000e+00 : f32
    %31 = vector.broadcast %cst_20 : f32 to vector<8x128xf32>
    %32 = arith.addf %31, %30 : vector<8x128xf32>
    %33 = tpu.reciprocal %32 : vector<8x128xf32> -> vector<8x128xf32>
    %c0_21 = arith.constant 0 : index
    %c0_22 = arith.constant 0 : index
    %34 = vector.load %arg8[%c0_21, %c0_22] : memref<8x128xf32, #tpu.memory_space<vmem>>, vector<8x128xf32>
    tpu.vector_store %arg8[%c0_21, %c0_22], %33 {strides = array<i32>} : memref<8x128xf32, #tpu.memory_space<vmem>>, vector<8x128xf32>,
    return
  }
  func.func @transform_0(%arg0: i32) -> (i32, i32) {
    %c0_i32 = arith.constant 0 : i32
    %c0_i32_0 = arith.constant 0 : i32
    return %arg0, %c0_i32 : i32, i32
  }
  func.func @transform_1(%arg0: i32) -> (i32, i32) {
    %c0_i32 = arith.constant 0 : i32
    %c0_i32_0 = arith.constant 0 : i32
    %c0_i32_1 = arith.constant 0 : i32
    return %c0_i32, %c0_i32_0 : i32, i32
  }
  func.func @transform_2(%arg0: i32) -> (i32, i32) {
    %c0_i32 = arith.constant 0 : i32
    %c0_i32_0 = arith.constant 0 : i32
    %c0_i32_1 = arith.constant 0 : i32
    return %c0_i32, %c0_i32_0 : i32, i32
  }
  func.func @transform_3(%arg0: i32) -> (i32, i32) {
    %c0_i32 = arith.constant 0 : i32
    %c0_i32_0 = arith.constant 0 : i32
    %c0_i32_1 = arith.constant 0 : i32
    return %c0_i32, %c0_i32_0 : i32, i32
  }
  func.func @transform_4(%arg0: i32) -> (i32, i32) {
    %c0_i32 = arith.constant 0 : i32
    %c0_i32_0 = arith.constant 0 : i32
    %c0_i32_1 = arith.constant 0 : i32
    return %c0_i32, %c0_i32_0 : i32, i32
  }
  func.func @transform_5(%arg0: i32) -> (i32, i32) {
    %c0_i32 = arith.constant 0 : i32
    %c0_i32_0 = arith.constant 0 : i32
    %c0_i32_1 = arith.constant 0 : i32
    return %c0_i32, %c0_i32_0 : i32, i32
  }
  func.func @transform_6(%arg0: i32) -> (i32, i32) {
    %c0_i32 = arith.constant 0 : i32
    %c0_i32_0 = arith.constant 0 : i32
    %c0_i32_1 = arith.constant 0 : i32
    return %c0_i32, %c0_i32_0 : i32, i32
  }
  func.func @transform_7(%arg0: i32) -> (i32, i32) {
    %c0_i32 = arith.constant 0 : i32
    %c0_i32_0 = arith.constant 0 : i32
    return %arg0, %c0_i32 : i32, i32
  }
}

</mosaic_0001>

<bundles_post_ra>
// kernel: tpu_custom_call.1
= control target key start
LH: loop header
LB: loop body
LE: loop exit
PB: predicated region body
PF: predicated region fallthrough
CT: control target
= control target key end

     0   :  { %12 = vsyncpa [#allocation3], 0  ;;  %s2012_s0 = inlined_call_operand.hbm [shape: bf16[8,784], index: 0, kind: input, shape index: {}]   ;;  %s2013_s1 = inlined_call_operand.hbm [shape: bf16[784,256], index: 1, kind: input, shape index: {}]   ;;  %s2014_s2 = inlined_call_operand.vmem [shape: f32[1,256], index: 2, kind: input, shape index: {}]   ;;  %s2015_s3 = inlined_call_operand.hbm [shape: bf16[256,256], index: 3, kind: input, shape index: {}]   ;;  %s2016_s4 = inlined_call_operand.vmem [shape: f32[1,256], index: 4, kind: input, shape index: {}]   ;;  %s2017_s5 = inlined_call_operand.hbm [shape: bf16[256,128], index: 5, kind: input, shape index: {}]   ;;  %s2018_s6 = inlined_call_operand.vmem [shape: f32[1,128], index: 6, kind: input, shape index: {}]   ;;  %s2019_s7 = inlined_call_operand.hbm [shape: f32[8,128], index: 7, kind: output, shape index: {}]  }
   0x1   :  { %13 = vsyncpa [#allocation6], 0 }
   0x2   :  { %14 = vsyncpa [#allocation9], 0 }
   0x3   :  { %15 = vsyncpa [#allocation4], 0  ;;  %s1875_s24 = smov [#allocation5]   ;;  %s1757_s28 = scalar_lea.hbm %s2013_s1, 12544 }
   0x4   :  { %s31_s25 = sshll.u32 %s1875_s24, 4  ;;  %p1758_p0 = scmp.ne.s32.totalorder %s2013_s1, %s1757_s28  ;;  %s32_s25 = int_to_ptr.vmem [resolvable:$true] %s31_s25 }
   0x5   :  { %p1761_p1 = scmp.lt.u32.totalorder %s1757_s28, %s2013_s1 }
   0x7   :  { %p1763_p2 = pnand %p1761_p1, %p1758_p0 }
   0x9   :  { %1766 = shalt.err (!%p1763_p2)
}
   0xa   :  { %s1767_s10 = scalar_lea.vmem %s32_s25, 12544  ;;  %p1772_p4 = scmp.lt.s32.totalorder %s32_s25, %s32_s25 }
   0xb   :  { %p1768_p3 = scmp.ne.s32.totalorder %s32_s25, %s1767_s10  ;;  %p1773_p5 = scmp.lt.s32.totalorder %s1767_s10, %s1767_s10 }
   0xd   :  { %p1774_p6 = por %p1773_p5, %p1772_p4 }
   0xf   :  { %p1775_p7 = pnand %p1774_p6, %p1768_p3 }
  0x11   :  { %1778 = shalt.err (!%p1775_p7)
}
  0x12   :  { %s1876_s11 = smov 128   ;;  %s1877_s12 = smov 8  }
  0x13   :  { %37 = dma.hbm_to_vmem [thread:$0]  %s2013_s1, 12544, %s32_s25, [#allocation6], %s1876_s11, %s1876_s11, %s1877_s12  }
  0x14   :  { %s1878_s15 = smov [#allocation2]   ;;  %s1879_s17 = smov [#allocation7]  }
  0x15   :  { %s22_s16 = sshll.u32 %s1878_s15, 4  ;;  %s45_s18 = sshll.u32 %s1879_s17, 4  ;;  %s23_s16 = int_to_ptr.vmem [resolvable:$true] %s22_s16  ;;  %s46_s18 = int_to_ptr.vmem [resolvable:$true] %s45_s18 }
  0x16   :  { %s1779_s21 = scalar_lea.hbm %s2012_s0, 448 }
  0x17   :  { %p1780_p8 = scmp.ne.s32.totalorder %s2012_s0, %s1779_s21  ;;  %p1783_p9 = scmp.lt.u32.totalorder %s1779_s21, %s2012_s0 }
  0x19   :  { %p1785_p10 = pnand %p1783_p9, %p1780_p8 }
  0x1b   :  { %1788 = shalt.err (!%p1785_p10)
}
  0x1c   :  { %s1789_s1 = scalar_lea.vmem %s23_s16, 448  ;;  %p1794_p12 = scmp.lt.s32.totalorder %s23_s16, %s23_s16 }
  0x1d   :  { %p1790_p11 = scmp.ne.s32.totalorder %s23_s16, %s1789_s1  ;;  %p1795_p13 = scmp.lt.s32.totalorder %s1789_s1, %s1789_s1 }
  0x1f   :  { %p1796_p0 = por %p1795_p13, %p1794_p12 }
  0x21   :  { %p1797_p1 = pnand %p1796_p0, %p1790_p11 }
  0x23   :  { %1800 = shalt.err (!%p1797_p1)
}
  0x24   :  { %25 = dma.hbm_to_vmem [thread:$0]  %s2012_s0, 448, %s23_s16, [#allocation3]  }
  0x25   :  { %s1801_s30 = scalar_lea.hbm %s2015_s3, 4096 }
  0x26   :  { %p1802_p2 = scmp.ne.s32.totalorder %s2015_s3, %s1801_s30  ;;  %p1805_p3 = scmp.lt.u32.totalorder %s1801_s30, %s2015_s3 }
  0x28   :  { %p1807_p4 = pnand %p1805_p3, %p1802_p2 }
  0x2a   :  { %1810 = shalt.err (!%p1807_p4)
}
  0x2b   :  { %s1811_s14 = scalar_lea.vmem %s46_s18, 4096  ;;  %p1816_p6 = scmp.lt.s32.totalorder %s46_s18, %s46_s18 }
  0x2c   :  { %p1812_p5 = scmp.ne.s32.totalorder %s46_s18, %s1811_s14  ;;  %p1817_p7 = scmp.lt.s32.totalorder %s1811_s14, %s1811_s14 }
  0x2e   :  { %p1818_p8 = por %p1817_p7, %p1816_p6 }
  0x30   :  { %p1819_p9 = pnand %p1818_p8, %p1812_p5 }
  0x32   :  { %1822 = shalt.err (!%p1819_p9)
}
  0x33   :  { %51 = dma.hbm_to_vmem [thread:$0]  %s2015_s3, 4096, %s46_s18, [#allocation6], %s1876_s11, %s1876_s11, %s1877_s12  }
  0x34   :  { %s1880_s16 = smov [#allocation8]   ;;  %s1823_s21 = scalar_lea.hbm %s2017_s5, 2048 }
  0x35   :  { %s59_s17 = sshll.u32 %s1880_s16, 4  ;;  %p1824_p10 = scmp.ne.s32.totalorder %s2017_s5, %s1823_s21  ;;  %s60_s17 = int_to_ptr.vmem [resolvable:$true] %s59_s17 }
  0x36   :  { %p1827_p11 = scmp.lt.u32.totalorder %s1823_s21, %s2017_s5 }
  0x38   :  { %p1829_p12 = pnand %p1827_p11, %p1824_p10 }
  0x3a   :  { %1832 = shalt.err (!%p1829_p12)
}
  0x3b   :  { %s1833_s1 = scalar_lea.vmem %s60_s17, 2048  ;;  %p1838_p0 = scmp.lt.s32.totalorder %s60_s17, %s60_s17 }
  0x3c   :  { %p1834_p13 = scmp.ne.s32.totalorder %s60_s17, %s1833_s1  ;;  %p1839_p1 = scmp.lt.s32.totalorder %s1833_s1, %s1833_s1 }
  0x3e   :  { %p1840_p2 = por %p1839_p1, %p1838_p0 }
  0x40   :  { %p1841_p3 = pnand %p1840_p2, %p1834_p13 }
  0x42   :  { %1844 = shalt.err (!%p1841_p3)
}
  0x43   :  { %s1881_s3 = smov 64   ;;  %s1882_s11 = smov 4  }
  0x44   :  { %65 = dma.hbm_to_vmem [thread:$0]  %s2017_s5, 2048, %s60_s17, [#allocation9], %s1881_s3, %s1881_s3, %s1882_s11  }
  0x45   :  { %1867 = dma.done.wait [#allocation3], 448  }
  0x46   :  { %1868 = vsyncadd [#allocation3], 4294966848 }
  0x47   :  { %1869 = dma.done.wait [#allocation6], 16640  }
  0x48   :  { %1870 = vsyncadd [#allocation6], 4294950656 }
  0x49   :  { %1871 = dma.done.wait [#allocation9], 2048  }
  0x4a   :  { %1872 = vsyncadd [#allocation9], 4294965248  ;;  %v1535_v0 = vld [vmem:[#allocation5 + $0x104] ss:$8 sps:$4 sm:$0xff]   ;;  %v1537_v1 = vld [vmem:[#allocation5 + $0x100] ss:$8 sps:$4 sm:$0xff]  }
  0x4b   :  { %754 = vmatprep.subr.bf16.mxu0 %v1535_v0  ;;  %v1538_v2 = vld [vmem:[#allocation5 + $0x114] ss:$8 sps:$4 sm:$0xff]   ;;  %v1540_v3 = vld [vmem:[#allocation5 + $0x110] ss:$8 sps:$4 sm:$0xff]   ;;  %v1541_v4 = vld [vmem:[#allocation5 + $0x124] ss:$8 sps:$4 sm:$0xff]  }
  0x4c   :  { %755 = vmatpush1.bf16.msra.mxu0 %v1537_v1  ;;  %v1543_v5 = vld [vmem:[#allocation5 + $0x120] ss:$8 sps:$4 sm:$0xff]   ;;  %v1544_v6 = vld [vmem:[#allocation5 + $0x134] ss:$8 sps:$4 sm:$0xff]   ;;  %v1546_v7 = vld [vmem:[#allocation5 + $0x130] ss:$8 sps:$4 sm:$0xff]  }
  0x4d   :  { %756 = vmatprep.subr.bf16.mxu0 %v1538_v2  ;;  %v1547_v8 = vld [vmem:[#allocation5 + $0x144] ss:$8 sps:$4 sm:$0xff]   ;;  %v1549_v9 = vld [vmem:[#allocation5 + $0x140] ss:$8 sps:$4 sm:$0xff]   ;;  %v1550_v10 = vld [vmem:[#allocation5 + $0x154] ss:$8 sps:$4 sm:$0xff]  }
  0x4e   :  { %v1552_v11 = vld [vmem:[#allocation5 + $0x150] ss:$8 sps:$4 sm:$0xff]   ;;  %v1553_v12 = vld [vmem:[#allocation5 + $0x164] ss:$8 sps:$4 sm:$0xff]   ;;  %v1555_v15 = vld [vmem:[#allocation5 + $0x160] ss:$8 sps:$4 sm:$0xff]  }
  0x4f   :  { %v1979_v13 = vld [vmem:[#allocation2 + $0x8] sm:$0xff]  ;;  %v1556_v16 = vld [vmem:[#allocation5 + $0x174] ss:$8 sps:$4 sm:$0xff]   ;;  %v1596_v19 = vld [vmem:[#allocation5] ss:$8 sps:$4 sm:$0xff]   ;;  %vm709_vm0 = vcmask 130048  }
  0x50   :  { %757 = vmatpush1.bf16.msra.mxu0 %v1540_v3  ;;  %v1339_v14 = vcombine.high %v1979_v13, %v1979_v13  ;;  %v1591_v17 = vld [vmem:[#allocation5 + $0x4] ss:$8 sps:$4 sm:$0xff]   ;;  %v1558_v18 = vld [vmem:[#allocation5 + $0x170] ss:$8 sps:$4 sm:$0xff]   ;;  %v1597_v20 = vld [vmem:[#allocation5 + $0x14] ss:$8 sps:$4 sm:$0xff]   ;;  %v1338_v57 = vcombine.low %v1979_v13, %v1979_v13 }
  0x51   :  { %758 = vmatprep.subr.bf16.mxu0 %v1541_v4  ;;  %713 = vmatprep.subr.bf16.mxu1 %v1591_v17  ;;  %v1559_v21 = vld [vmem:[#allocation5 + $0x184] ss:$8 sps:$4 sm:$0xff]   ;;  %v1602_v22 = vld [vmem:[#allocation5 + $0x10] ss:$8 sps:$4 sm:$0xff]   ;;  %v1561_v24 = vld [vmem:[#allocation5 + $0x180] ss:$8 sps:$4 sm:$0xff]  }
  0x52   :  { %786 = vmatprep.mubr.bf16.mxu0 %v1339_v14  ;;  %714 = vmatpush1.bf16.msra.mxu1 %v1596_v19  ;;  %v1603_v23 = vld [vmem:[#allocation5 + $0x24] ss:$8 sps:$4 sm:$0xff]   ;;  %v1562_v25 = vld [vmem:[#allocation5 + $0x194] ss:$8 sps:$4 sm:$0xff]   ;;  %v1608_v26 = vld [vmem:[#allocation5 + $0x20] ss:$8 sps:$4 sm:$0xff]  }
  0x53   :  { %715 = vmatprep.subr.bf16.mxu1 %v1597_v20  ;;  %v1609_v27 = vld [vmem:[#allocation5 + $0x34] ss:$8 sps:$4 sm:$0xff]   ;;  %v1564_v28 = vld [vmem:[#allocation5 + $0x190] ss:$8 sps:$4 sm:$0xff]   ;;  %v1565_v29 = vld [vmem:[#allocation5 + $0x1a4] ss:$8 sps:$4 sm:$0xff]  }
  0x54   :  { %759 = vmatpush1.bf16.msra.mxu0 %v1543_v5  ;;  %v1614_v30 = vld [vmem:[#allocation5 + $0x30] ss:$8 sps:$4 sm:$0xff]   ;;  %v1615_v31 = vld [vmem:[#allocation5 + $0x44] ss:$8 sps:$4 sm:$0xff]   ;;  %v1567_v32 = vld [vmem:[#allocation5 + $0x1a0] ss:$8 sps:$4 sm:$0xff]  }
  0x55   :  { %760 = vmatprep.subr.bf16.mxu0 %v1544_v6  ;;  %v1568_v33 = vld [vmem:[#allocation5 + $0x1b4] ss:$8 sps:$4 sm:$0xff]   ;;  %v1620_v34 = vld [vmem:[#allocation5 + $0x40] ss:$8 sps:$4 sm:$0xff]   ;;  %v1570_v36 = vld [vmem:[#allocation5 + $0x1b0] ss:$8 sps:$4 sm:$0xff]  }
  0x56   :  { %716 = vmatpush1.bf16.msra.mxu1 %v1602_v22  ;;  %v1621_v35 = vld [vmem:[#allocation5 + $0x54] ss:$8 sps:$4 sm:$0xff]   ;;  %v1571_v37 = vld [vmem:[#allocation5 + $0x1c4] ss:$8 sps:$4 sm:$0xff]   ;;  %v1626_v38 = vld [vmem:[#allocation5 + $0x50] ss:$8 sps:$4 sm:$0xff]  }
  0x57   :  { %717 = vmatprep.subr.bf16.mxu1 %v1603_v23  ;;  %v1627_v39 = vld [vmem:[#allocation5 + $0x64] ss:$8 sps:$4 sm:$0xff]   ;;  %v1573_v40 = vld [vmem:[#allocation5 + $0x1c0] ss:$8 sps:$4 sm:$0xff]   ;;  %v1574_v41 = vld [vmem:[#allocation5 + $0x1d4] ss:$8 sps:$4 sm:$0xff]  }
  0x58   :  { %761 = vmatpush1.bf16.msra.mxu0 %v1546_v7  ;;  %v1632_v42 = vld [vmem:[#allocation5 + $0x60] ss:$8 sps:$4 sm:$0xff]   ;;  %v1633_v43 = vld [vmem:[#allocation5 + $0x74] ss:$8 sps:$4 sm:$0xff]   ;;  %v1576_v44 = vld [vmem:[#allocation5 + $0x1d0] ss:$8 sps:$4 sm:$0xff]  }
  0x59   :  { %762 = vmatprep.subr.bf16.mxu0 %v1547_v8  ;;  %v1577_v45 = vld [vmem:[#allocation5 + $0x1e4] ss:$8 sps:$4 sm:$0xff]   ;;  %v1638_v46 = vld [vmem:[#allocation5 + $0x70] ss:$8 sps:$4 sm:$0xff]   ;;  %v1579_v48 = vld [vmem:[#allocation5 + $0x1e0] ss:$8 sps:$4 sm:$0xff]  }
  0x5a   :  { %718 = vmatpush1.bf16.msra.mxu1 %v1608_v26  ;;  %v1639_v47 = vld [vmem:[#allocation5 + $0x84] ss:$8 sps:$4 sm:$0xff]   ;;  %v1580_v49 = vld [vmem:[#allocation5 + $0x1f4] ss:$8 sps:$4 sm:$0xff]   ;;  %v1644_v50 = vld [vmem:[#allocation5 + $0x80] ss:$8 sps:$4 sm:$0xff]  }
  0x5b   :  { %719 = vmatprep.subr.bf16.mxu1 %v1609_v27  ;;  %v1645_v51 = vld [vmem:[#allocation5 + $0x94] ss:$8 sps:$4 sm:$0xff]   ;;  %v1582_v52 = vld [vmem:[#allocation5 + $0x1f0] ss:$8 sps:$4 sm:$0xff]   ;;  %v1587_v53 = vld [vmem:[#allocation5 + $0x204] ss:$8 sps:$4 sm:$0xff]  }
  0x5c   :  { %763 = vmatpush1.bf16.msra.mxu0 %v1549_v9  ;;  %v1650_v54 = vld [vmem:[#allocation5 + $0x90] ss:$8 sps:$4 sm:$0xff]   ;;  %v1651_v55 = vld [vmem:[#allocation5 + $0xa4] ss:$8 sps:$4 sm:$0xff]   ;;  %v1585_v58 = vld [vmem:[#allocation5 + $0x200] ss:$8 sps:$4 sm:$0xff]  }
  0x5d   :  { %764 = vmatprep.subr.bf16.mxu0 %v1550_v10  ;;  %v1983_v56 = vld [vmem:[#allocation2 + $0x10] sm:$0xff]  ;;  %v1656_v61 = vld [vmem:[#allocation5 + $0xa0] ss:$8 sps:$4 sm:$0xff]   ;;  %v1595_v1 = vld [vmem:[#allocation5 + $0x224] ss:$8 sps:$4 sm:$0xff]   ;;  %s1884_s29 = smov [#allocation10]  }
  0x5e   :  { %720 = vmatpush1.bf16.msra.mxu1 %v1614_v30  ;;  %v1341_v59 = vcombine.high %v1983_v56, %v1983_v56  ;;  %v1590_v60 = vld [vmem:[#allocation5 + $0x214] ss:$8 sps:$4 sm:$0xff]   ;;  %v1588_v63 = vld [vmem:[#allocation5 + $0x210] ss:$8 sps:$4 sm:$0xff]   ;;  %v81_v0 = vld [vmem:[#allocation2] sm:$0xff]  ;;  %s1325_s30 = sshll.u32 %s1884_s29, 4  ;;  %s1326_s30 = int_to_ptr.vmem [resolvable:$true] %s1325_s30 }
  0x5f   :  { %721 = vmatprep.subr.bf16.mxu1 %v1615_v31  ;;  %v1657_v62 = vld [vmem:[#allocation5 + $0xb4] ss:$8 sps:$4 sm:$0xff]   ;;  %v1337_v2 = vcombine.high %v81_v0, %v81_v0  ;;  %v1662_v3 = vld [vmem:[#allocation5 + $0xb0] ss:$8 sps:$4 sm:$0xff]   ;;  %v1663_v4 = vld [vmem:[#allocation5 + $0xc4] ss:$8 sps:$4 sm:$0xff]   ;;  %p1850_p5 = scmp.lt.s32.totalorder %s1326_s30, %s1326_s30 }
  0x60   :  { %765 = vmatpush1.bf16.msra.mxu0 %v1552_v11  ;;  %v1593_v5 = vld [vmem:[#allocation5 + $0x220] ss:$8 sps:$4 sm:$0xff]   ;;  %v1601_v6 = vld [vmem:[#allocation5 + $0x234] ss:$8 sps:$4 sm:$0xff]   ;;  %v1599_v9 = vld [vmem:[#allocation5 + $0x230] ss:$8 sps:$4 sm:$0xff]  }
  0x61   :  { %766 = vmatprep.subr.bf16.mxu0 %v1553_v12  ;;  %745 = vmatprep.mubr.bf16.mxu1 %v1337_v2  ;;  %v1668_v7 = vld [vmem:[#allocation5 + $0xc0] ss:$8 sps:$4 sm:$0xff]   ;;  %v1669_v8 = vld [vmem:[#allocation5 + $0xd4] ss:$8 sps:$4 sm:$0xff]   ;;  %v1607_v10 = vld [vmem:[#allocation5 + $0x244] ss:$8 sps:$4 sm:$0xff]  }
  0x62   :  { %722 = vmatpush1.bf16.msra.mxu1 %v1620_v34  ;;  %v1674_v11 = vld [vmem:[#allocation5 + $0xd0] ss:$8 sps:$4 sm:$0xff]   ;;  %v1677_v12 = vld [vmem:[#allocation5 + $0xe4] ss:$8 sps:$4 sm:$0xff]   ;;  %v1605_v13 = vld [vmem:[#allocation5 + $0x240] ss:$8 sps:$4 sm:$0xff]  }
  0x63   :  { %723 = vmatprep.subr.bf16.mxu1 %v1621_v35  ;;  %v1613_v14 = vld [vmem:[#allocation5 + $0x254] ss:$8 sps:$4 sm:$0xff]   ;;  %v1611_v17 = vld [vmem:[#allocation5 + $0x250] ss:$8 sps:$4 sm:$0xff]   ;;  %v1631_v27 = vld [vmem:[#allocation5 + $0x284] ss:$8 sps:$4 sm:$0xff]  }
  0x64   :  { %767 = vmatpush1.bf16.msra.mxu0 %v1555_v15  ;;  %v1682_v15 = vld [vmem:[#allocation5 + $0xe0] ss:$8 sps:$4 sm:$0xff]   ;;  %v1685_v19 = vld [vmem:[#allocation5 + $0xf0] ss:$8 sps:$4 sm:$0xff]   ;;  %v1691_v20 = vld [vmem:[#allocation7 + $0x4] ss:$8 sps:$4 sm:$0xff]  }
  0x65   :  { %768 = vmatprep.subr.bf16.mxu0 %v1556_v16  ;;  %v1683_v16 = vld [vmem:[#allocation5 + $0xf4] ss:$8 sps:$4 sm:$0xff]   ;;  %v1689_v23 = vld [vmem:[#allocation7] ss:$8 sps:$4 sm:$0xff]   ;;  %v1629_v30 = vld [vmem:[#allocation5 + $0x280] ss:$8 sps:$4 sm:$0xff]  }
  0x66   :  { %724 = vmatpush1.bf16.msra.mxu1 %v1626_v38  ;;  %v1625_v22 = vld [vmem:[#allocation5 + $0x274] ss:$8 sps:$4 sm:$0xff]   ;;  %v1623_v26 = vld [vmem:[#allocation5 + $0x270] ss:$8 sps:$4 sm:$0xff]   ;;  %v1643_v35 = vld [vmem:[#allocation5 + $0x2a4] ss:$8 sps:$4 sm:$0xff]  }
  0x67   :  { %725 = vmatprep.subr.bf16.mxu1 %v1627_v39  ;;  %v1637_v31 = vld [vmem:[#allocation5 + $0x294] ss:$8 sps:$4 sm:$0xff]   ;;  %v1635_v34 = vld [vmem:[#allocation5 + $0x290] ss:$8 sps:$4 sm:$0xff]   ;;  %v1641_v38 = vld [vmem:[#allocation5 + $0x2a0] ss:$8 sps:$4 sm:$0xff]  }
  0x68   :  { %769 = vmatpush1.bf16.msra.mxu0 %v1558_v18  ;;  %v1619_v18 = vld [vmem:[#allocation5 + $0x264] ss:$8 sps:$4 sm:$0xff]   ;;  %v1649_v39 = vld [vmem:[#allocation5 + $0x2b4] ss:$8 sps:$4 sm:$0xff]   ;;  %s1845_s8 = scalar_lea.vmem %s1326_s30, 128 }
  0x69   :  { %770 = vmatprep.subr.bf16.mxu0 %v1559_v21  ;;  %v1617_v21 = vld [vmem:[#allocation5 + $0x260] ss:$8 sps:$4 sm:$0xff]   ;;  %v1724_v2 = vld [vmem:[#allocation7 + $0xb4] ss:$8 sps:$4 sm:$0xff]   ;;  %p1846_p4 = scmp.ne.s32.totalorder %s1326_s30, %s1845_s8  ;;  %p1851_p6 = scmp.lt.s32.totalorder %s1845_s8, %s1845_s8 }
  0x6a   :  { %726 = vmatpush1.bf16.msra.mxu1 %v1632_v42  ;;  %v1647_v42 = vld [vmem:[#allocation5 + $0x2b0] ss:$8 sps:$4 sm:$0xff]  }
  0x6b   :  { %727 = vmatprep.subr.bf16.mxu1 %v1633_v43  ;;  %v1655_v43 = vld [vmem:[#allocation5 + $0x2c4] ss:$8 sps:$4 sm:$0xff]   ;;  %p1852_p7 = por %p1851_p6, %p1850_p5 }
  0x6c   :  { %771 = vmatpush1.bf16.msra.mxu0 %v1561_v24  ;;  %v1336_v24 = vcombine.low %v81_v0, %v81_v0  ;;  %v1679_v0 = vld [vmem:[#allocation5 + $0x300] ss:$8 sps:$4 sm:$0xff]  }
  0x6d   :  { %772 = vmatprep.subr.bf16.mxu0 %v1562_v25  ;;  %v1694_v25 = vld [vmem:[#allocation7 + $0x14] ss:$8 sps:$4 sm:$0xff]   ;;  %p1853_p8 = pnand %p1852_p7, %p1846_p4 }
  0x6e   :  { %728 = vmatpush1.bf16.msra.mxu1 %v1638_v46  ;;  %v1653_v46 = vld [vmem:[#allocation5 + $0x2c0] ss:$8 sps:$4 sm:$0xff]  }
  0x6f   :  { %729 = vmatprep.subr.bf16.mxu1 %v1639_v47  ;;  %v1661_v47 = vld [vmem:[#allocation5 + $0x2d4] ss:$8 sps:$4 sm:$0xff]  }
  0x70   :  { %773 = vmatpush1.bf16.msra.mxu0 %v1564_v28  ;;  %v1692_v28 = vld [vmem:[#allocation7 + $0x10] ss:$8 sps:$4 sm:$0xff]  }
  0x71   :  { %774 = vmatprep.subr.bf16.mxu0 %v1565_v29  ;;  %v1697_v29 = vld [vmem:[#allocation7 + $0x24] ss:$8 sps:$4 sm:$0xff]  }
  0x72   :  { %730 = vmatpush1.bf16.msra.mxu1 %v1644_v50  ;;  %v1659_v50 = vld [vmem:[#allocation5 + $0x2d0] ss:$8 sps:$4 sm:$0xff]  }
  0x73   :  { %731 = vmatprep.subr.bf16.mxu1 %v1645_v51  ;;  %v1667_v51 = vld [vmem:[#allocation5 + $0x2e4] ss:$8 sps:$4 sm:$0xff]  }
  0x74   :  { %775 = vmatpush1.bf16.msra.mxu0 %v1567_v32  ;;  %v1695_v32 = vld [vmem:[#allocation7 + $0x20] ss:$8 sps:$4 sm:$0xff]  }
  0x75   :  { %776 = vmatprep.subr.bf16.mxu0 %v1568_v33  ;;  %v1700_v33 = vld [vmem:[#allocation7 + $0x34] ss:$8 sps:$4 sm:$0xff]  }
  0x76   :  { %732 = vmatpush1.bf16.msra.mxu1 %v1650_v54  ;;  %v1665_v54 = vld [vmem:[#allocation5 + $0x2e0] ss:$8 sps:$4 sm:$0xff]  }
  0x77   :  { %733 = vmatprep.subr.bf16.mxu1 %v1651_v55  ;;  %v1673_v55 = vld [vmem:[#allocation5 + $0x2f4] ss:$8 sps:$4 sm:$0xff]  }
  0x78   :  { %777 = vmatpush1.bf16.msra.mxu0 %v1570_v36  ;;  %v1698_v36 = vld [vmem:[#allocation7 + $0x30] ss:$8 sps:$4 sm:$0xff]  }
  0x79   :  { %778 = vmatprep.subr.bf16.mxu0 %v1571_v37  ;;  %v1703_v37 = vld [vmem:[#allocation7 + $0x44] ss:$8 sps:$4 sm:$0xff]  }
  0x7a   :  { %734 = vmatpush1.bf16.msra.mxu1 %v1656_v61  ;;  %v1716_v61 = vld [vmem:[#allocation7 + $0x90] ss:$8 sps:$4 sm:$0xff]  }
  0x7b   :  { %735 = vmatprep.subr.bf16.mxu1 %v1657_v62  ;;  %v1721_v62 = vld [vmem:[#allocation7 + $0xa4] ss:$8 sps:$4 sm:$0xff]  }
  0x7c   :  { %779 = vmatpush1.bf16.msra.mxu0 %v1573_v40  ;;  %v1701_v40 = vld [vmem:[#allocation7 + $0x40] ss:$8 sps:$4 sm:$0xff]  }
  0x7d   :  { %780 = vmatprep.subr.bf16.mxu0 %v1574_v41  ;;  %v1706_v41 = vld [vmem:[#allocation7 + $0x54] ss:$8 sps:$4 sm:$0xff]  }
  0x7e   :  { %736 = vmatpush1.bf16.msra.mxu1 %v1662_v3  ;;  %v1883_v3 = vmov 0  }
  0x7f   :  { %737 = vmatprep.subr.bf16.mxu1 %v1663_v4  ;;  %v1722_v4 = vld [vmem:[#allocation7 + $0xb0] ss:$8 sps:$4 sm:$0xff]  }
  0x80   :  { %781 = vmatpush1.bf16.msra.mxu0 %v1576_v44  ;;  %v1704_v44 = vld [vmem:[#allocation7 + $0x50] ss:$8 sps:$4 sm:$0xff]  }
  0x81   :  { %782 = vmatprep.subr.bf16.mxu0 %v1577_v45  ;;  %v1709_v45 = vld [vmem:[#allocation7 + $0x64] ss:$8 sps:$4 sm:$0xff]  }
  0x82   :  { %738 = vmatpush1.bf16.msra.mxu1 %v1668_v7  ;;  %v1688_v7 = vld [vmem:[#allocation2 + $0x18] ss:$0 sps:$4 sm:$0xff]  }
  0x83   :  { %739 = vmatprep.subr.bf16.mxu1 %v1669_v8  ;;  %v1730_v8 = vld [vmem:[#allocation7 + $0xd4] ss:$8 sps:$4 sm:$0xff]  }
  0x84   :  { %783 = vmatpush1.bf16.msra.mxu0 %v1579_v48  ;;  %v1707_v48 = vld [vmem:[#allocation7 + $0x60] ss:$8 sps:$4 sm:$0xff]  }
  0x85   :  { %784 = vmatprep.subr.bf16.mxu0 %v1580_v49  ;;  %v1712_v49 = vld [vmem:[#allocation7 + $0x74] ss:$8 sps:$4 sm:$0xff]  }
  0x86   :  { %740 = vmatpush1.bf16.msra.mxu1 %v1674_v11  ;;  %v1736_v11 = vld [vmem:[#allocation7 + $0xf4] ss:$8 sps:$4 sm:$0xff]  }
  0x87   :  { %741 = vmatprep.subr.bf16.mxu1 %v1677_v12  ;;  %v1734_v12 = vld [vmem:[#allocation7 + $0xf0] ss:$8 sps:$4 sm:$0xff]  }
  0x88   :  { %785 = vmatpush1.bf16.msra.mxu0 %v1582_v52  ;;  %v1710_v52 = vld [vmem:[#allocation7 + $0x70] ss:$8 sps:$4 sm:$0xff]  }
  0x89   :  { %795 = vmatprep.subr.bf16.mxu0 %v1587_v53  ;;  %v1715_v53 = vld [vmem:[#allocation7 + $0x84] ss:$8 sps:$4 sm:$0xff]  }
  0x8a   :  { %742 = vmatpush1.bf16.msra.mxu1 %v1682_v15 }
  0x8b   :  { %787 = vmatmul.mubr.bf16.vlgmr.msra.gmra.mrb[0].mxu0 %v1338_v57  ;;  %743 = vmatprep.subr.bf16.mxu1 %v1683_v16  ;;  %v1713_v57 = vld [vmem:[#allocation7 + $0x80] ss:$8 sps:$4 sm:$0xff]  }
  0x8c   :  { %796 = vmatpush1.bf16.msra.mxu0 %v1585_v58  ;;  %827 = vmatprep.mubr.bf16.mxu0 %v1341_v59  ;;  %v1718_v58 = vld [vmem:[#allocation7 + $0x94] ss:$8 sps:$4 sm:$0xff]   ;;  %v1671_v59 = vld [vmem:[#allocation5 + $0x2f0] ss:$8 sps:$4 sm:$0xff]  }
  0x8d   :  { %797 = vmatprep.subr.bf16.mxu0 %v1590_v60  ;;  %v1681_v60 = vld [vmem:[#allocation5 + $0x304] ss:$8 sps:$4 sm:$0xff]  }
  0x8e   :  { %744 = vmatpush1.bf16.msra.mxu1 %v1685_v19 }
  0x8f   :  { %1089 = vmatprep.subr.bf16.mxu1 %v1691_v20 }
  0x90   :  { %798 = vmatpush1.bf16.msra.mxu0 %v1588_v63  ;;  %v1340_v63 = vcombine.low %v1983_v56, %v1983_v56  ;;  %v1728_v56 = vld [vmem:[#allocation7 + $0xd0] ss:$8 sps:$4 sm:$0xff]  }
  0x91   :  { %799 = vmatprep.subr.bf16.mxu0 %v1595_v1  ;;  %746 = vmatmul.mubr.bf16.vlgmr.msra.gmra.mrb[0].mxu1 %v1336_v24  ;;  %v1719_v1 = vld [vmem:[#allocation7 + $0xa0] ss:$8 sps:$4 sm:$0xff]  }
  0x92   :  { %1090 = vmatpush1.bf16.msra.mxu1 %v1689_v23 }
  0x93   :  { %1091 = vmatprep.subr.bf16.mxu1 %v1694_v25 }
  0x94   :  { %800 = vmatpush1.bf16.msra.mxu0 %v1593_v5  ;;  %v1727_v5 = vld [vmem:[#allocation7 + $0xc4] ss:$8 sps:$4 sm:$0xff]  }
  0x95   :  { %801 = vmatprep.subr.bf16.mxu0 %v1601_v6  ;;  %v1725_v6 = vld [vmem:[#allocation7 + $0xc0] ss:$8 sps:$4 sm:$0xff]  }
  0x96   :  { %1092 = vmatpush1.bf16.msra.mxu1 %v1692_v28 }
  0x97   :  { %1093 = vmatprep.subr.bf16.mxu1 %v1697_v29 }
  0x98   :  { %802 = vmatpush1.bf16.msra.mxu0 %v1599_v9  ;;  %v1733_v9 = vld [vmem:[#allocation7 + $0xe4] ss:$8 sps:$4 sm:$0xff]  }
  0x99   :  { %803 = vmatprep.subr.bf16.mxu0 %v1607_v10  ;;  %v1731_v10 = vld [vmem:[#allocation7 + $0xe0] ss:$8 sps:$4 sm:$0xff]  }
  0x9a   :  { %1094 = vmatpush1.bf16.msra.mxu1 %v1695_v32 }
  0x9b   :  { %1095 = vmatprep.subr.bf16.mxu1 %v1700_v33 }
  0x9c   :  { %804 = vmatpush1.bf16.msra.mxu0 %v1605_v13  ;;  %v1737_v13 = vld [vmem:[#allocation8 + $0x40] sm:$0xff]  }
  0x9d   :  { %805 = vmatprep.subr.bf16.mxu0 %v1613_v14 }
  0x9e   :  { %1096 = vmatpush1.bf16.msra.mxu1 %v1698_v36 }
  0x9f   :  { %1097 = vmatprep.subr.bf16.mxu1 %v1703_v37 }
  0xa0   :  { %806 = vmatpush1.bf16.msra.mxu0 %v1611_v17 }
  0xa1   :  { %807 = vmatprep.subr.bf16.mxu0 %v1619_v18  ;;  %v185_v18 = vlaneseq }
  0xa2   :  { %1098 = vmatpush1.bf16.msra.mxu1 %v1701_v40  ;;  %v1739_v40 = vld [vmem:[#allocation8 + $0x48] sm:$0xff]  }
  0xa3   :  { %1099 = vmatprep.subr.bf16.mxu1 %v1706_v41  ;;  %v186_v19 = vshrl.u32 %v185_v18, 7  ;;  %v1740_v41 = vld [vmem:[#allocation8 + $0x8] sm:$0xff]  }
  0xa4   :  { %808 = vmatpush1.bf16.msra.mxu0 %v1617_v21  ;;  %v183_v21 = vld [vmem:[%s2014_s2] sm:$0x3] }
  0xa5   :  { %809 = vmatprep.subr.bf16.mxu0 %v1625_v22  ;;  %v187_v20 = vsub.s32 0, %v186_v19  ;;  %v191_v22 = vsub.s32 1, %v186_v19 }
  0xa6   :  { %1100 = vmatpush1.bf16.msra.mxu1 %v1704_v44  ;;  %v1743_v44 = vld [vmem:[#allocation8 + $0x58] sm:$0xff]  }
  0xa7   :  { %1101 = vmatprep.subr.bf16.mxu1 %v1709_v45  ;;  %v188_v23 = vrot.slane %v183_v21, %v187_v20  ;;  %v192_v24 = vrot.slane %v183_v21, %v191_v22  ;;  %v1744_v45 = vld [vmem:[#allocation8 + $0x18] sm:$0xff]  }
  0xa8   :  { %810 = vmatpush1.bf16.msra.mxu0 %v1623_v26 }
  0xa9   :  { %811 = vmatprep.subr.bf16.mxu0 %v1631_v27 }
  0xaa   :  { %1102 = vmatpush1.bf16.msra.mxu1 %v1707_v48  ;;  %v1747_v48 = vld [vmem:[#allocation8 + $0x68] sm:$0xff]  }
  0xab   :  { %1103 = vmatprep.subr.bf16.mxu1 %v1712_v49  ;;  %v1748_v49 = vld [vmem:[#allocation8 + $0x28] sm:$0xff]  }
  0xac   :  { %812 = vmatpush1.bf16.msra.mxu0 %v1629_v30 }
  0xad   :  { %813 = vmatprep.subr.bf16.mxu0 %v1637_v31 }
  0xae   :  { %1104 = vmatpush1.bf16.msra.mxu1 %v1710_v52  ;;  %v1751_v52 = vld [vmem:[#allocation8 + $0x78] sm:$0xff]  }
  0xaf   :  { %1105 = vmatprep.subr.bf16.mxu1 %v1715_v53  ;;  %v1752_v53 = vld [vmem:[#allocation8 + $0x38] sm:$0xff]  }
  0xb0   :  { %814 = vmatpush1.bf16.msra.mxu0 %v1635_v34 }
  0xb1   :  { %815 = vmatprep.subr.bf16.mxu0 %v1643_v35 }
  0xb2   :  { %1106 = vmatpush1.bf16.msra.mxu1 %v1713_v57 }
  0xb3   :  { %1107 = vmatprep.subr.bf16.mxu1 %v1718_v58 }
  0xb4   :  { %816 = vmatpush1.bf16.msra.mxu0 %v1641_v38  ;;  %v1738_v38 = vld [vmem:[#allocation8] sm:$0xff]  }
  0xb5   :  { %817 = vmatprep.subr.bf16.mxu0 %v1649_v39 }
  0xb6   :  { %1108 = vmatpush1.bf16.msra.mxu1 %v1716_v61 }
  0xb7   :  { %1109 = vmatprep.subr.bf16.mxu1 %v1721_v62 }
  0xb8   :  { %818 = vmatpush1.bf16.msra.mxu0 %v1647_v42  ;;  %v1741_v42 = vld [vmem:[#allocation8 + $0x50] sm:$0xff]  }
  0xb9   :  { %819 = vmatprep.subr.bf16.mxu0 %v1655_v43  ;;  %v1742_v43 = vld [vmem:[#allocation8 + $0x10] sm:$0xff]  }
  0xba   :  { %1110 = vmatpush1.bf16.msra.mxu1 %v1719_v1 }
  0xbb   :  { %1111 = vmatprep.subr.bf16.mxu1 %v1724_v2 }
  0xbc   :  { %820 = vmatpush1.bf16.msra.mxu0 %v1653_v46  ;;  %v1745_v46 = vld [vmem:[#allocation8 + $0x60] sm:$0xff]  }
  0xbd   :  { %821 = vmatprep.subr.bf16.mxu0 %v1661_v47  ;;  %v1746_v47 = vld [vmem:[#allocation8 + $0x20] sm:$0xff]  }
  0xbe   :  { %1112 = vmatpush1.bf16.msra.mxu1 %v1722_v4 }
  0xbf   :  { %1113 = vmatprep.subr.bf16.mxu1 %v1727_v5 }
  0xc0   :  { %822 = vmatpush1.bf16.msra.mxu0 %v1659_v50  ;;  %v1749_v50 = vld [vmem:[#allocation8 + $0x70] sm:$0xff]  }
  0xc1   :  { %823 = vmatprep.subr.bf16.mxu0 %v1667_v51  ;;  %v1750_v51 = vld [vmem:[#allocation8 + $0x30] sm:$0xff]  }
  0xc2   :  { %1114 = vmatpush1.bf16.msra.mxu1 %v1725_v6 }
  0xc3   :  { %1115 = vmatprep.subr.bf16.mxu1 %v1730_v8 }
  0xc4   :  { %824 = vmatpush1.bf16.msra.mxu0 %v1665_v54  ;;  %v917_v54 = vld [vmem:[%s2016_s4] sm:$0x3] }
  0xc5   :  { %825 = vmatprep.subr.bf16.mxu0 %v1673_v55  ;;  %v922_v55 = vrot.slane %v917_v54, %v187_v20  ;;  %v926_v57 = vrot.slane %v917_v54, %v191_v22 }
  0xc6   :  { %1116 = vmatpush1.bf16.msra.mxu1 %v1728_v56 }
  0xc7   :  { %1117 = vmatprep.subr.bf16.mxu1 %v1733_v9 }
  0xc8   :  { %826 = vmatpush1.bf16.msra.mxu0 %v1671_v59 }
  0xc9   :  { %836 = vmatprep.subr.bf16.mxu0 %v1681_v60 }
  0xca   :  { %1118 = vmatpush1.bf16.msra.mxu1 %v1731_v10 }
  0xcb   :  { %828 = vmatmul.mubr.bf16.vlgmr.msra.gmra.mrb[0].mxu0 %v1340_v63  ;;  %1119 = vmatprep.subr.bf16.mxu1 %v1736_v11 }
  0xcc   :  { %837 = vmatpush1.bf16.msra.mxu0 %v1679_v0  ;;  %868 = vmatprep.mubr.bf16.mxu0 %v1883_v3 }
  0xce   :  { %1120 = vmatpush1.bf16.msra.mxu1 %v1734_v12 }
  0xcf   :  { %1491 = vmatprep.subr.bf16.mxu1 %v1737_v13 }
  0xd7   :  { %1441 = vmatmul.mubr.msk.bf16.vlgmr.msra.gmra.mrb[0].mxu0 %vm709_vm0, %v1688_v7  ;;  %v1474_v7 = vld [vmem:[%s2018_s6] ss:$0 sm:$0xff] }
 0x164   :  { %v747_v14 = vpop.f32.mrb[0].mxu1 }
 0x165   :  { %v749_v15 = vpop.f32.mrb[1].mxu1  ;;  %v748_v25 = vadd.f32 %v747_v14, %v188_v23 }
 0x166   :  { %v751_v16 = vpop.f32.mrb[2].mxu1  ;;  %v750_v26 = vadd.f32 %v749_v15, %v192_v24 }
 0x167   :  { %v752_v17 = vpop.f32.mrb[3].mxu1 }
 0x1aa   :  { %v870_v27 = vpop.f32.mrb[0].mxu0 }
 0x1ab   :  { %v1514_v28 = vadd.f32 %v870_v27, %v748_v25  ;;  %v872_v29 = vpop.f32.mrb[1].mxu0 }
 0x1ac   :  { %v1516_v30 = vadd.f32 %v872_v29, %v750_v26  ;;  %v874_v31 = vpop.f32.mrb[2].mxu0 }
 0x1ad   :  { %vm877_vm1 = vcmp.gt.f32.partialorder %v1514_v28, 0.0  ;;  %v879_v32 = vmul.f32 0.2, %v1514_v28  ;;  %v875_v33 = vpop.f32.mrb[3].mxu0 }
 0x1ae   :  { %vm878_vm2 = vcmp.gt.f32.partialorder %v1516_v30, 0.0  ;;  %v880_v34 = vmul.f32 0.2, %v1516_v30 }
 0x1af   :  { %v881_v35 = vsel %vm877_vm1, %v1514_v28, %v879_v32 }
 0x1b0   :  { %v882_v36 = vsel %vm878_vm2, %v1516_v30, %v880_v34  ;;  %v883_v39 = vpack.c.bf16 %v881_v35, %v881_v35 }
 0x1b1   :  { %v884_v37 = vpack.c.bf16 %v882_v36, %v882_v36 }
 0x1b3   :  { %1121 = vmatprep.mubr.bf16.mxu1 %v884_v37 }
 0x1b4   :  { %1122 = vmatmul.mubr.bf16.vlgmr.msra.gmra.mrb[4].mxu1 %v883_v39 }
 0x1b5   :  { %1492 = vmatpush3.bf16.msra.mxu1 %v1738_v38 }
 0x1b6   :  { %1493 = vmatprep.subr.bf16.mxu1 %v1739_v40 }
 0x1b9   :  { %1494 = vmatpush3.bf16.msra.mxu1 %v1740_v41 }
 0x1ba   :  { %1495 = vmatprep.subr.bf16.mxu1 %v1741_v42 }
 0x1bd   :  { %1496 = vmatpush3.bf16.msra.mxu1 %v1742_v43 }
 0x1be   :  { %1497 = vmatprep.subr.bf16.mxu1 %v1743_v44 }
 0x1c1   :  { %1498 = vmatpush3.bf16.msra.mxu1 %v1744_v45 }
 0x1c2   :  { %1499 = vmatprep.subr.bf16.mxu1 %v1745_v46 }
 0x1c5   :  { %1500 = vmatpush3.bf16.msra.mxu1 %v1746_v47 }
 0x1c6   :  { %1501 = vmatprep.subr.bf16.mxu1 %v1747_v48 }
 0x1c9   :  { %1502 = vmatpush3.bf16.msra.mxu1 %v1748_v49 }
 0x1ca   :  { %1503 = vmatprep.subr.bf16.mxu1 %v1749_v50 }
 0x1cd   :  { %1504 = vmatpush3.bf16.msra.mxu1 %v1750_v51 }
 0x1ce   :  { %1505 = vmatprep.subr.bf16.mxu1 %v1751_v52 }
 0x1d1   :  { %1506 = vmatpush3.bf16.msra.mxu1 %v1752_v53 }
 0x287   :  { %v1123_v58 = vpop.f32.mrb[4].mxu1 }
 0x288   :  { %v1124_v59 = vadd.f32 %v1123_v58, %v922_v55  ;;  %v1125_v60 = vpop.f32.mrb[5].mxu1 }
 0x289   :  { %v1126_v61 = vadd.f32 %v1125_v60, %v926_v57  ;;  %v1127_v62 = vpop.f32.mrb[6].mxu1 }
 0x28a   :  { %vm1130_vm3 = vcmp.gt.f32.partialorder %v1124_v59, 0.0  ;;  %v1132_v63 = vmul.f32 0.2, %v1124_v59  ;;  %v1128_v0 = vpop.f32.mrb[7].mxu1 }
 0x28b   :  { %vm1131_vm4 = vcmp.gt.f32.partialorder %v1126_v61, 0.0  ;;  %v1133_v1 = vmul.f32 0.2, %v1126_v61 }
 0x28c   :  { %v1134_v2 = vsel %vm1130_vm3, %v1124_v59, %v1132_v63 }
 0x28d   :  { %v1135_v3 = vsel %vm1131_vm4, %v1126_v61, %v1133_v1  ;;  %v1136_v5 = vpack.c.bf16 %v1134_v2, %v1134_v2 }
 0x28e   :  { %v1137_v4 = vpack.c.bf16 %v1135_v3, %v1135_v3 }
 0x290   :  { %1305 = vmatprep.mubr.bf16.mxu1 %v1137_v4 }
 0x291   :  { %1306 = vmatmul.mubr.bf16.vlgmr.msra.gmra.mrb[8].mxu1 %v1136_v5 }
 0x364   :  { %v1507_v6 = vpop.f32.mrb[8].mxu1 }
 0x365   :  { %v1508_v56 = vpop.f32.mrb[9].mxu1 }
 0x366   :  { %v1509_v8 = vadd.f32 %v1508_v56, %v1507_v6  ;;  %v1510_v9 = vpop.f32.mrb[10].mxu1 }
 0x367   :  { %v1511_v10 = vpop.f32.mrb[11].mxu1 }
 0x368   :  { %v1308_v11 = vadd.f32 %v1509_v8, %v1474_v7 }
 0x36a   :  { %v1313_v12 = vsub.f32 0.0, %v1308_v11 }
 0x36c   :  { %v1314_v13 = vmul.f32 1.442695, %v1313_v12 }
 0x36e   :  { %1753 = vpow2.f32 %v1314_v13 }
 0x378   :  { %v1754_v14 = vpop.eup %1753 }
 0x379   :  { %v1316_v15 = vadd.f32 1.0, %v1754_v14 }
 0x37b   :  { %1755 = vrcp.f32 %v1316_v15 }
 0x385   :  { %v1756_v16 = vpop.eup %1755 }
 0x386   :  { %1318 = vst [vmem:[#allocation10] sm:$0xff] %v1756_v16 }
 0x387   :  { %1856 = shalt.err (!%p1853_p8)
}
 0x388   :  { %s1857_s10 = scalar_lea.hbm %s2019_s7, 128 }
 0x389   :  { %p1858_p9 = scmp.ne.s32.totalorder %s2019_s7, %s1857_s10  ;;  %p1861_p10 = scmp.lt.u32.totalorder %s1857_s10, %s2019_s7 }
 0x38b   :  { %p1863_p11 = pnand %p1861_p10, %p1858_p9 }
 0x38d   :  { %1866 = shalt.err (!%p1863_p11)
}
 0x38e   :  { %1328 = dma.vmem_to_hbm [thread:$0]  %s1326_s30, 128, %s2019_s7, [#allocation4]  }
 0x38f   :  { %1873 = dma.done.wait [#allocation4], 128  }
 0x390   :  { %1874 = vsyncadd [#allocation4], 4294967168 }
 0x391   :  { %1332 = vsyncpa [#allocation3], 1 }
 0x392   :  { %1333 = vsyncpa [#allocation6], 1 }
 0x393   :  { %1334 = vsyncpa [#allocation9], 1 }
 0x394   :  { %1335 = vsyncpa [#allocation4], 1 }

</bundles_post_ra>
